<compile_context>
chip_gen: v7x
topology: tpu7x:2x2x1
jax: 0.10.0
libtpu: 0.0.40
codegen_flags: <defaults>
</compile_context>

<pallas_src>
import math

import jax
import jax.numpy as jnp
from jax.experimental import pallas as pl
from jax.experimental.pallas import tpu as pltpu

LANE = 128                # vreg lane width (last dim)
SUB = 8                   # sublanes per vreg tile
TARGET_BLOCK_ROWS = 2048  # 2048x128 f32 block = 1 MiB per input per buffer
PAD_X = -1e4              # exp(-1e4) == 0 in f32 -> padded elements contribute 0
                          # loss (finite so it stays finite for bf16/f16 inputs)


def _stable_bce_with_logits(x, y):
    # Numerically stable BCE with logits (same formulation torch uses):
    #   loss = max(x, 0) - x*y + log(1 + exp(-|x|))
    return jnp.maximum(x, 0.0) - x * y + jnp.log1p(jnp.exp(-jnp.abs(x)))


def _bce_partial_kernel(x_ref, y_ref, out_ref):
    """Accumulate lane-wise (8,128) partial sums of the BCE-with-logits loss."""

    @pl.when(pl.program_id(1) == 0)
    def _():
        out_ref[...] = jnp.zeros_like(out_ref)

    x = x_ref[...].astype(jnp.float32)
    y = y_ref[...].astype(jnp.float32)
    loss = _stable_bce_with_logits(x, y)

    # Reduce (block_rows, 128) -> (8, 128) with pure vreg adds (the reshape is
    # layout-preserving: it only regroups whole (8,128) sublane tiles).
    out_ref[...] += loss.reshape(-1, SUB, LANE).sum(axis=0)


def _bce_elementwise_kernel(x_ref, y_ref, out_ref):
    """Per-element loss for reduction='none' (lane-dense 128-wide stores)."""
    x = x_ref[...].astype(jnp.float32)
    y = y_ref[...].astype(jnp.float32)
    out_ref[...] = _stable_bce_with_logits(x, y).astype(out_ref.dtype)


def _plan_tiling(n):
    """Return (block_rows, num_chunks, inner) for n flat elements."""
    rows = -(-n // LANE)              # lane-dense rows
    rows = -(-rows // SUB) * SUB      # round up to a full (8,128) tile
    if rows <= TARGET_BLOCK_ROWS:
        return rows, 1, 1
    block_rows = TARGET_BLOCK_ROWS
    blocks = -(-rows // block_rows)
    num_chunks = 2 if blocks >= 2 else 1   # outer 'parallel' axis (v7x: 2 TCs)
    blocks = -(-blocks // num_chunks) * num_chunks
    inner = blocks // num_chunks
    return block_rows, num_chunks, inner


def cross_entropy_loss(y_pred, y_true, reduction="mean"):
    """JAX/Pallas equivalent of the module's forward (BCE-with-logits)."""
    if y_pred.ndim == 1:
        y_pred = y_pred.reshape(-1, 1)
    if y_true.ndim == 1:
        y_true = y_true.reshape(-1, 1)
    assert y_pred.shape == y_true.shape
    if reduction not in ("mean", "sum", "none"):
        raise ValueError(f"unsupported reduction: {reduction!r}")

    n = math.prod(y_pred.shape)
    block_rows, num_chunks, inner = _plan_tiling(n)
    rows = num_chunks * inner * block_rows
    n_pad = rows * LANE

    # Lane-dense slabs; logits padded so padding contributes exactly zero loss.
    xf = jnp.pad(jnp.ravel(y_pred), (0, n_pad - n),
                 constant_values=PAD_X).reshape(rows, LANE)
    yf = jnp.pad(jnp.ravel(y_true), (0, n_pad - n)).reshape(rows, LANE)

    if reduction == "none":
        out = pl.pallas_call(
            _bce_elementwise_kernel,
            out_shape=jax.ShapeDtypeStruct((rows, LANE), jnp.float32),
            grid_spec=pltpu.PrefetchScalarGridSpec(
                num_scalar_prefetch=0,
                grid=(num_chunks * inner,),
                in_specs=[
                    pl.BlockSpec((block_rows, LANE), lambda i: (i, 0)),
                    pl.BlockSpec((block_rows, LANE), lambda i: (i, 0)),
                ],
                out_specs=pl.BlockSpec((block_rows, LANE), lambda i: (i, 0)),
            ),
            compiler_params=pltpu.CompilerParams(
                dimension_semantics=("parallel",)),
        )(xf, yf)
        return jnp.ravel(out)[:n].reshape(y_pred.shape).astype(y_pred.dtype)

    bytes_accessed = (n_pad * (xf.dtype.itemsize + yf.dtype.itemsize)
                      + num_chunks * SUB * LANE * 4)
    cost = pl.CostEstimate(flops=5 * n_pad,
                           transcendentals=2 * n_pad,
                           bytes_accessed=bytes_accessed)

    partials = pl.pallas_call(
        _bce_partial_kernel,
        out_shape=jax.ShapeDtypeStruct((num_chunks * SUB, LANE), jnp.float32),
        grid_spec=pltpu.PrefetchScalarGridSpec(
            num_scalar_prefetch=0,
            grid=(num_chunks, inner),
            in_specs=[
                pl.BlockSpec((block_rows, LANE), lambda c, b: (c * inner + b, 0)),
                pl.BlockSpec((block_rows, LANE), lambda c, b: (c * inner + b, 0)),
            ],
            out_specs=pl.BlockSpec((SUB, LANE), lambda c, b: (c, 0)),
        ),
        compiler_params=pltpu.CompilerParams(
            dimension_semantics=("parallel", "arbitrary")),
        cost_estimate=cost,
    )(xf, yf)

    total = jnp.sum(partials)
    if reduction == "mean":
        return total / jnp.float32(n)
    return total  # 'sum'


# Alias making the actual math explicit (the module name is a misnomer).
binary_cross_entropy_with_logits = cross_entropy_loss


def _reference(y_pred, y_true, reduction="mean"):
    if y_pred.ndim == 1:
        y_pred = y_pred.reshape(-1, 1)
    if y_true.ndim == 1:
        y_true = y_true.reshape(-1, 1)
    x = y_pred.astype(jnp.float32)
    y = y_true.astype(jnp.float32)
    loss = _stable_bce_with_logits(x, y)
    if reduction == "mean":
        return jnp.mean(loss)
    if reduction == "sum":
        return jnp.sum(loss)
    return loss


if __name__ == "__main__":
    key = jax.random.PRNGKey(0)
    k1, k2, k3, k4 = jax.random.split(key, 4)

    # ---- small 1-D case (module reshapes 1-D to (-1, 1)); ragged padding ----
    n = 200
    y_pred = jax.random.normal(k1, (n,), dtype=jnp.float32) * 2.0
    y_true = (jax.random.uniform(k2, (n,)) > 0.5).astype(jnp.float32)

    loss = cross_entropy_loss(y_pred, y_true, reduction="mean")
    jax.block_until_ready(loss)
    ref = _reference(y_pred, y_true, reduction="mean")
    assert jnp.allclose(loss, ref, rtol=1e-5, atol=1e-6), (loss, ref)

    loss_sum = cross_entropy_loss(y_pred, y_true, reduction="sum")
    jax.block_until_ready(loss_sum)
    ref_sum = _reference(y_pred, y_true, reduction="sum")
    assert jnp.allclose(loss_sum, ref_sum, rtol=1e-5, atol=1e-5), (loss_sum, ref_sum)

    loss_none = cross_entropy_loss(y_pred, y_true, reduction="none")
    jax.block_until_ready(loss_none)
    ref_none = _reference(y_pred, y_true, reduction="none")
    assert loss_none.shape == ref_none.shape, (loss_none.shape, ref_none.shape)
    assert jnp.allclose(loss_none, ref_none, rtol=1e-5, atol=1e-6)

    # ---- 2-D case exercising the multi-block / 2-chunk 'parallel' path ------
    yp2 = jax.random.normal(k3, (1200, 300), dtype=jnp.float32) * 2.0
    yt2 = (jax.random.uniform(k4, (1200, 300)) > 0.5).astype(jnp.float32)

    loss2 = cross_entropy_loss(yp2, yt2, reduction="mean")
    jax.block_until_ready(loss2)
    ref2 = _reference(yp2, yt2, reduction="mean")
    assert jnp.allclose(loss2, ref2, rtol=1e-5, atol=1e-6), (loss2, ref2)

    loss2_sum = cross_entropy_loss(yp2, yt2, reduction="sum")
    jax.block_until_ready(loss2_sum)
    ref2_sum = _reference(yp2, yt2, reduction="sum")
    assert jnp.allclose(loss2_sum, ref2_sum, rtol=1e-5, atol=1e-2), (loss2_sum, ref2_sum)

    print("KERNEL_OK")
</pallas_src>

<mosaic_0001>
module attributes {stable_mosaic.version = 11 : i64} {
  func.func @_bce_partial_kernel(%arg0: i32, %arg1: i32, %arg2: memref<8x128xf32, #tpu.memory_space<vmem>>, %arg3: memref<8x128xf32, #tpu.memory_space<vmem>>, %arg4: memref<8x128xf32, #tpu.memory_space<vmem>>) attributes {dimension_semantics = [#tpu.dimension_semantics<parallel>, #tpu.dimension_semantics<arbitrary>], iteration_bounds = array<i64: 1, 1>, scalar_prefetch = 0 : i64, scratch_operands = 0 : i64, tpu.core_type = #tpu.core_type<tc>, window_params = [{transform_indices = @transform_0, window_bounds = array<i64: 8, 128>}, {transform_indices = @transform_1, window_bounds = array<i64: 8, 128>}, {transform_indices = @transform_2, window_bounds = array<i64: 8, 128>}]} {
    %c0_i32 = arith.constant 0 : i32
    %0 = arith.cmpi eq, %arg1, %c0_i32 : i32
    %1 = arith.extui %0 : i1 to i32
    %c0_i32_0 = arith.constant 0 : i32
    %2 = arith.cmpi ne, %1, %c0_i32_0 : i32
    scf.if %2 {
      %cst_10 = arith.constant 0.000000e+00 : f32
      %20 = vector.broadcast %cst_10 : f32 to vector<8x128xf32>
      %c0_11 = arith.constant 0 : index
      %c0_12 = arith.constant 0 : index
      %21 = vector.load %arg4[%c0_11, %c0_12] : memref<8x128xf32, #tpu.memory_space<vmem>>, vector<8x128xf32>
      tpu.vector_store %arg4[%c0_11, %c0_12], %20 {strides = array<i32>} : memref<8x128xf32, #tpu.memory_space<vmem>>, vector<8x128xf32>,
    } else {
    }
    %c0 = arith.constant 0 : index
    %c0_1 = arith.constant 0 : index
    %3 = vector.load %arg2[%c0, %c0_1] : memref<8x128xf32, #tpu.memory_space<vmem>>, vector<8x128xf32>
    %c0_2 = arith.constant 0 : index
    %c0_3 = arith.constant 0 : index
    %4 = vector.load %arg3[%c0_2, %c0_3] : memref<8x128xf32, #tpu.memory_space<vmem>>, vector<8x128xf32>
    %cst = arith.constant 0.000000e+00 : f32
    %5 = vector.broadcast %cst : f32 to vector<8x128xf32>
    %6 = arith.maximumf %3, %5 : vector<8x128xf32>
    %7 = arith.mulf %3, %4 : vector<8x128xf32>
    %8 = arith.subf %6, %7 : vector<8x128xf32>
    %9 = math.absf %3 : vector<8x128xf32>
    %cst_4 = arith.constant 0.000000e+00 : f32
    %10 = vector.broadcast %cst_4 : f32 to vector<8x128xf32>
    %11 = arith.subf %10, %9 : vector<8x128xf32>
    %12 = math.exp %11 : vector<8x128xf32>
    %13 = math.log1p %12 : vector<8x128xf32>
    %14 = arith.addf %8, %13 : vector<8x128xf32>
    %c0_5 = arith.constant 0 : index
    %c0_6 = arith.constant 0 : index
    %15 = vector.load %arg4[%c0_5, %c0_6] : memref<8x128xf32, #tpu.memory_space<vmem>>, vector<8x128xf32>
    %16 = vector.shape_cast %14 : vector<8x128xf32> to vector<1x8x128xf32>
    %cst_7 = arith.constant dense<0.000000e+00> : vector<8x128xf32>
    %17 = vector.multi_reduction <add>, %16, %cst_7 [0] : vector<1x8x128xf32> to vector<8x128xf32>
    %18 = arith.addf %15, %17 : vector<8x128xf32>
    %c0_8 = arith.constant 0 : index
    %c0_9 = arith.constant 0 : index
    %19 = vector.load %arg4[%c0_8, %c0_9] : memref<8x128xf32, #tpu.memory_space<vmem>>, vector<8x128xf32>
    tpu.vector_store %arg4[%c0_8, %c0_9], %18 {strides = array<i32>} : memref<8x128xf32, #tpu.memory_space<vmem>>, vector<8x128xf32>,
    return
  }
  func.func @transform_0(%arg0: i32, %arg1: i32) -> (i32, i32) {
    %c1_i32 = arith.constant 1 : i32
    %0 = arith.muli %arg0, %c1_i32 : i32
    %1 = arith.addi %0, %arg1 : i32
    %c0_i32 = arith.constant 0 : i32
    %c0_i32_0 = arith.constant 0 : i32
    return %1, %c0_i32 : i32, i32
  }
  func.func @transform_1(%arg0: i32, %arg1: i32) -> (i32, i32) {
    %c1_i32 = arith.constant 1 : i32
    %0 = arith.muli %arg0, %c1_i32 : i32
    %1 = arith.addi %0, %arg1 : i32
    %c0_i32 = arith.constant 0 : i32
    %c0_i32_0 = arith.constant 0 : i32
    return %1, %c0_i32 : i32, i32
  }
  func.func @transform_2(%arg0: i32, %arg1: i32) -> (i32, i32) {
    %c0_i32 = arith.constant 0 : i32
    %c0_i32_0 = arith.constant 0 : i32
    return %arg0, %c0_i32 : i32, i32
  }
}

</mosaic_0001>

<bundles_post_ra>
// kernel: tpu_custom_call.1
= control target key start
LH: loop header
LB: loop body
LE: loop exit
PB: predicated region body
PF: predicated region fallthrough
CT: control target
= control target key end

     0   :  { %7 = vsyncpa [#allocation3], 0  ;;  %s222_s0 = inlined_call_operand.hbm [shape: f32[8,128], index: 0, kind: input, shape index: {}]   ;;  %s223_s1 = inlined_call_operand.hbm [shape: f32[8,128], index: 1, kind: input, shape index: {}]   ;;  %s224_s2 = inlined_call_operand.hbm [shape: f32[8,128], index: 2, kind: output, shape index: {}]  }
   0x1   :  { %8 = vsyncpa [#allocation6], 0 }
   0x2   :  { %9 = vsyncpa [#allocation4], 0  ;;  %s168_s9 = smov [#allocation2]   ;;  %s169_s11 = smov [#allocation5]  }
   0x3   :  { %s19_s10 = sshll.u32 %s168_s9, 4  ;;  %s32_s12 = sshll.u32 %s169_s11, 4  ;;  %s20_s10 = int_to_ptr.vmem [resolvable:$true] %s19_s10  ;;  %s33_s12 = int_to_ptr.vmem [resolvable:$true] %s32_s12 }
   0x4   :  { %s96_s15 = scalar_lea.hbm %s222_s0, 128 }
   0x5   :  { %p97_p0 = scmp.ne.s32.totalorder %s222_s0, %s96_s15  ;;  %p100_p1 = scmp.lt.u32.totalorder %s96_s15, %s222_s0 }
   0x7   :  { %p102_p2 = pnand %p100_p1, %p97_p0 }
   0x9   :  { %105 = shalt.err (!%p102_p2)
}
   0xa   :  { %s106_s20 = scalar_lea.vmem %s20_s10, 128  ;;  %p111_p4 = scmp.lt.s32.totalorder %s20_s10, %s20_s10 }
   0xb   :  { %p107_p3 = scmp.ne.s32.totalorder %s20_s10, %s106_s20  ;;  %p112_p5 = scmp.lt.s32.totalorder %s106_s20, %s106_s20 }
   0xd   :  { %p113_p6 = por %p112_p5, %p111_p4 }
   0xf   :  { %p114_p7 = pnand %p113_p6, %p107_p3 }
  0x11   :  { %117 = shalt.err (!%p114_p7)
}
  0x12   :  { %22 = dma.hbm_to_vmem [thread:$0]  %s222_s0, 128, %s20_s10, [#allocation3]  }
  0x13   :  { %s118_s25 = scalar_lea.hbm %s223_s1, 128 }
  0x14   :  { %p119_p8 = scmp.ne.s32.totalorder %s223_s1, %s118_s25  ;;  %p122_p9 = scmp.lt.u32.totalorder %s118_s25, %s223_s1 }
  0x16   :  { %p124_p10 = pnand %p122_p9, %p119_p8 }
  0x18   :  { %127 = shalt.err (!%p124_p10)
}
  0x19   :  { %s128_s30 = scalar_lea.vmem %s33_s12, 128  ;;  %p133_p12 = scmp.lt.s32.totalorder %s33_s12, %s33_s12 }
  0x1a   :  { %p129_p11 = scmp.ne.s32.totalorder %s33_s12, %s128_s30  ;;  %p134_p13 = scmp.lt.s32.totalorder %s128_s30, %s128_s30 }
  0x1c   :  { %p135_p0 = por %p134_p13, %p133_p12 }
  0x1e   :  { %p136_p1 = pnand %p135_p0, %p129_p11 }
  0x20   :  { %139 = shalt.err (!%p136_p1)
}
  0x21   :  { %35 = dma.hbm_to_vmem [thread:$0]  %s223_s1, 128, %s33_s12, [#allocation6]  }
  0x22   :  { %162 = dma.done.wait [#allocation3], 128  }
  0x23   :  { %163 = vsyncadd [#allocation3], 4294967168 }
  0x24   :  { %164 = dma.done.wait [#allocation6], 128  }
  0x25   :  { %165 = vsyncadd [#allocation6], 4294967168  ;;  %v49_v0 = vld [vmem:[#allocation2] sm:$0xff]  ;;  %v50_v7 = vld [vmem:[#allocation5] sm:$0xff]  ;;  %s170_s1 = smov [#allocation7]  }
  0x26   :  { %v54_v1 = vand.u32 2147483647, %v49_v0  ;;  %v51_v9 = vmax.f32 %v49_v0, 0.0  ;;  %v52_v10 = vmul.f32 %v50_v7, %v49_v0  ;;  %s78_s4 = sshll.u32 %s170_s1, 4  ;;  %s79_s4 = int_to_ptr.vmem [resolvable:$true] %s78_s4 }
  0x27   :  { %s140_s5 = scalar_lea.vmem %s79_s4, 128  ;;  %p145_p3 = scmp.lt.s32.totalorder %s79_s4, %s79_s4 }
  0x28   :  { %v55_v2 = vsub.f32 0.0, %v54_v1  ;;  %v53_v14 = vsub.f32 %v51_v9, %v52_v10  ;;  %p141_p2 = scmp.ne.s32.totalorder %s79_s4, %s140_s5  ;;  %p146_p4 = scmp.lt.s32.totalorder %s140_s5, %s140_s5 }
  0x2a   :  { %v56_v3 = vmul.f32 1.442695, %v55_v2  ;;  %p147_p5 = por %p146_p4, %p145_p3 }
  0x2c   :  { %92 = vpow2.f32 %v56_v3  ;;  %p148_p6 = pnand %p147_p5, %p141_p2 }
  0x36   :  { %v93_v4 = vpop.eup %92 }
  0x37   :  { %v58_v5 = vadd.f32 1.0, %v93_v4  ;;  %v61_v6 = vmul.f32 -0.5, %v93_v4  ;;  %v64_v11 = vand.u32 2147483647, %v93_v4 }
  0x39   :  { %94 = vlog2.f32 %v58_v5  ;;  %v62_v8 = vadd.f32 1.0, %v61_v6  ;;  %vm65_vm0 = vcmp.lt.f32.partialorder %v64_v11, 0.0004427343 }
  0x3b   :  { %v63_v12 = vmul.f32 %v93_v4, %v62_v8 }
  0x43   :  { %v95_v13 = vpop.eup %94 }
  0x44   :  { %v60_v15 = vmul.f32 0.6931472, %v95_v13 }
  0x46   :  { %v66_v16 = vsel %vm65_vm0, %v63_v12, %v60_v15 }
  0x47   :  { %v67_v17 = vadd.f32 %v66_v16, %v53_v14 }
  0x49   :  { %71 = vst [vmem:[#allocation7] sm:$0xff] %v67_v17 }
  0x4a   :  { %151 = shalt.err (!%p148_p6)
}
  0x4b   :  { %s152_s8 = scalar_lea.hbm %s224_s2, 128 }
  0x4c   :  { %p153_p7 = scmp.ne.s32.totalorder %s224_s2, %s152_s8  ;;  %p156_p8 = scmp.lt.u32.totalorder %s152_s8, %s224_s2 }
  0x4e   :  { %p158_p9 = pnand %p156_p8, %p153_p7 }
  0x50   :  { %161 = shalt.err (!%p158_p9)
}
  0x51   :  { %81 = dma.vmem_to_hbm [thread:$0]  %s79_s4, 128, %s224_s2, [#allocation4]  }
  0x52   :  { %166 = dma.done.wait [#allocation4], 128  }
  0x53   :  { %167 = vsyncadd [#allocation4], 4294967168 }
  0x54   :  { %85 = vsyncpa [#allocation3], 1 }
  0x55   :  { %86 = vsyncpa [#allocation6], 1 }
  0x56   :  { %87 = vsyncpa [#allocation4], 1 }

</bundles_post_ra>
